<compile_context>
chip_gen: v5e
topology: v5e:2x2
jax: 0.10.0
libtpu: 0.0.40
codegen_flags: <defaults>
</compile_context>

<pallas_src>
import math
import functools

import jax
import jax.numpy as jnp
import numpy as np
from jax.experimental import pallas as pl
from jax.experimental.pallas import tpu as pltpu


# ---------------------------------------------------------------------------
# Buffer construction (deterministic, mirrors nn.Module.__init__)
# ---------------------------------------------------------------------------
def make_positional_encoding(d_model: int, max_len: int = 5000) -> jnp.ndarray:
    position = jnp.arange(0, max_len, dtype=jnp.float32)[:, None]            # [max_len, 1]
    div_term = jnp.exp(
        jnp.arange(0, d_model, 2, dtype=jnp.float32) * (-math.log(10000.0) / d_model)
    )                                                                         # [d_model/2]
    pe = jnp.zeros((max_len, d_model), dtype=jnp.float32)
    pe = pe.at[:, 0::2].set(jnp.sin(position * div_term))
    pe = pe.at[:, 1::2].set(jnp.cos(position * div_term))
    return pe[:, None, :]                                                     # [max_len, 1, d_model]


# ---------------------------------------------------------------------------
# Kernels (operate on the lane-dense [rows, B*D] 2D view)
# ---------------------------------------------------------------------------
def _pe_add_kernel(x_ref, pe_ref, o_ref):
    o_ref[...] = x_ref[...] + pe_ref[...]


def _pe_add_dropout_kernel(x_ref, pe_ref, bits_ref, o_ref, *, threshold, inv_keep):
    # TODO(synk): random stream comes from jax.random bits, not torch's dropout RNG
    # (semantics identical: drop with prob p, scale kept values by 1/(1-p)).
    y = x_ref[...] + pe_ref[...]
    keep = bits_ref[...] >= jnp.uint32(threshold)          # P(keep) = 1 - p
    o_ref[...] = jnp.where(keep, y * jnp.asarray(inv_keep, y.dtype),
                           jnp.zeros_like(y))


# ---------------------------------------------------------------------------
# Wrapper
# ---------------------------------------------------------------------------
def positional_encoding_forward(x, pe, *, dropout_p=0.1, training=False,
                                rng_key=None, block_rows=None):
    """x: [S, B, D], pe: [max_len, 1, D] -> [S, B, D] (same dtype as x)."""
    S, B, D = x.shape
    W = B * D
    dtype = x.dtype

    # Lane-dense 2D views.  x2[s, b*D + d] == x[s, b, d]; pe2[s, b*D + d] == pe[s, d].
    x2 = x.reshape(S, W)
    pe2 = jnp.tile(pe[:S, 0, :].astype(dtype), (1, B))      # [S, W]

    # Row-tile sized for VMEM (~2 MiB per x tile; double buffering of x/pe/bits/out
    # stays well inside v7x's 32 MiB scoped VMEM).  Multiple of 8 sublanes.
    if block_rows is None:
        row_bytes = W * jnp.dtype(dtype).itemsize
        br = ((2 << 20) // max(row_bytes, 1)) // 8 * 8
        block_rows = S if (br >= S or br <= 0) else int(br)
    grid = (pl.cdiv(S, block_rows),)

    row_spec = pl.BlockSpec((block_rows, W), lambda i: (i, 0))
    out_shape = jax.ShapeDtypeStruct((S, W), dtype)
    compiler_params = pltpu.CompilerParams(dimension_semantics=("parallel",))

    # NOTE: in production, shapes this small would be fused into a neighboring
    # kernel / handled by plain JAX — a standalone 2 KiB dispatch is pure overhead.

    if (not training) or dropout_p == 0.0:
        cost = pl.CostEstimate(
            flops=S * W, transcendentals=0,
            bytes_accessed=(2 * S * W + S * W) * jnp.dtype(dtype).itemsize)
        out2 = pl.pallas_call(
            _pe_add_kernel,
            out_shape=out_shape,
            grid_spec=pltpu.PrefetchScalarGridSpec(
                num_scalar_prefetch=0, grid=grid,
                in_specs=[row_spec, row_spec],
                out_specs=row_spec),
            compiler_params=compiler_params,
            cost_estimate=cost,
        )(x2, pe2)
        return out2.reshape(S, B, D)

    if dropout_p >= 1.0:
        return jnp.zeros_like(x)

    if rng_key is None:
        rng_key = jax.random.PRNGKey(0)
    bits = jax.random.bits(rng_key, (S, W), dtype=jnp.uint32)

    threshold = min(int(round(float(dropout_p) * (1 << 32))), (1 << 32) - 1)
    inv_keep = 1.0 / (1.0 - float(dropout_p))
    kernel = functools.partial(_pe_add_dropout_kernel,
                               threshold=threshold, inv_keep=inv_keep)
    cost = pl.CostEstimate(
        flops=3 * S * W, transcendentals=0,
        bytes_accessed=(3 * S * W) * jnp.dtype(dtype).itemsize + 4 * S * W)
    out2 = pl.pallas_call(
        kernel,
        out_shape=out_shape,
        grid_spec=pltpu.PrefetchScalarGridSpec(
            num_scalar_prefetch=0, grid=grid,
            in_specs=[row_spec, row_spec, row_spec],
            out_specs=row_spec),
        compiler_params=compiler_params,
        cost_estimate=cost,
    )(x2, pe2, bits)
    return out2.reshape(S, B, D)


# ---------------------------------------------------------------------------
# Main
# ---------------------------------------------------------------------------
if __name__ == "__main__":
    S, B, D = 8, 2, 32          # seq len, batch, embed dim
    MAX_LEN = 64
    DROPOUT_P = 0.1

    key = jax.random.PRNGKey(0)
    key_x, key_drop = jax.random.split(key)
    x = jax.random.normal(key_x, (S, B, D), dtype=jnp.float32)

    pe = make_positional_encoding(D, max_len=MAX_LEN)       # [MAX_LEN, 1, D]

    # --- eval mode (dropout == identity): check against pure-JAX reference ---
    out_eval = positional_encoding_forward(x, pe, dropout_p=DROPOUT_P, training=False)
    out_eval = jax.block_until_ready(out_eval)
    ref = x + pe[:S]
    np.testing.assert_allclose(np.asarray(out_eval), np.asarray(ref),
                               rtol=1e-6, atol=1e-6)

    # --- training mode: dropout mask from integer-threshold compare ---------
    out_train = positional_encoding_forward(
        x, pe, dropout_p=DROPOUT_P, training=True, rng_key=key_drop)
    out_train = jax.block_until_ready(out_train)
    assert out_train.shape == (S, B, D)

    # kept entries must equal (x + pe) / (1 - p); dropped entries are exactly 0
    out_np = np.asarray(out_train)
    ref_np = np.asarray(ref) / (1.0 - DROPOUT_P)
    kept = out_np != 0.0
    np.testing.assert_allclose(out_np[kept], ref_np[kept], rtol=1e-6, atol=1e-6)

    print("KERNEL_OK")
</pallas_src>

<mosaic_0001>
module attributes {stable_mosaic.version = 11 : i64} {
  func.func @_pe_add_kernel(%arg0: i32, %arg1: memref<8x64xf32, #tpu.memory_space<vmem>>, %arg2: memref<8x64xf32, #tpu.memory_space<vmem>>, %arg3: memref<8x64xf32, #tpu.memory_space<vmem>>) attributes {dimension_semantics = [#tpu.dimension_semantics<parallel>], iteration_bounds = array<i64: 1>, scalar_prefetch = 0 : i64, scratch_operands = 0 : i64, tpu.core_type = #tpu.core_type<tc>, window_params = [{transform_indices = @transform_0, window_bounds = array<i64: 8, 64>}, {transform_indices = @transform_1, window_bounds = array<i64: 8, 64>}, {transform_indices = @transform_2, window_bounds = array<i64: 8, 64>}]} {
    %c0 = arith.constant 0 : index
    %c0_0 = arith.constant 0 : index
    %0 = vector.load %arg1[%c0, %c0_0] : memref<8x64xf32, #tpu.memory_space<vmem>>, vector<8x64xf32>
    %c0_1 = arith.constant 0 : index
    %c0_2 = arith.constant 0 : index
    %1 = vector.load %arg2[%c0_1, %c0_2] : memref<8x64xf32, #tpu.memory_space<vmem>>, vector<8x64xf32>
    %2 = arith.addf %0, %1 : vector<8x64xf32>
    %c0_3 = arith.constant 0 : index
    %c0_4 = arith.constant 0 : index
    %3 = vector.load %arg3[%c0_3, %c0_4] : memref<8x64xf32, #tpu.memory_space<vmem>>, vector<8x64xf32>
    tpu.vector_store %arg3[%c0_3, %c0_4], %2 {strides = array<i32>} : memref<8x64xf32, #tpu.memory_space<vmem>>, vector<8x64xf32>,
    return
  }
  func.func @transform_0(%arg0: i32) -> (i32, i32) {
    %c0_i32 = arith.constant 0 : i32
    %c0_i32_0 = arith.constant 0 : i32
    return %arg0, %c0_i32 : i32, i32
  }
  func.func @transform_1(%arg0: i32) -> (i32, i32) {
    %c0_i32 = arith.constant 0 : i32
    %c0_i32_0 = arith.constant 0 : i32
    return %arg0, %c0_i32 : i32, i32
  }
  func.func @transform_2(%arg0: i32) -> (i32, i32) {
    %c0_i32 = arith.constant 0 : i32
    %c0_i32_0 = arith.constant 0 : i32
    return %arg0, %c0_i32 : i32, i32
  }
}

</mosaic_0001>

<bundles_post_ra>
// kernel: tpu_custom_call.1
= control target key start
LH: loop header
LB: loop body
LE: loop exit
PB: predicated region body
PF: predicated region fallthrough
CT: control target
= control target key end

     0   :  { %7 = vsyncpa [#allocation3], 0  ;;  %s171_s0 = inlined_call_operand.hbm [shape: f32[8,64], index: 0, kind: input, shape index: {}]   ;;  %s172_s1 = inlined_call_operand.hbm [shape: f32[8,64], index: 1, kind: input, shape index: {}]   ;;  %s173_s2 = inlined_call_operand.hbm [shape: f32[8,64], index: 2, kind: output, shape index: {}]  }
   0x1   :  { %8 = vsyncpa [#allocation6], 0 }
   0x2   :  { %9 = vsyncpa [#allocation4], 0  ;;  %s15_s11 = sshll.u32 %s171_s0, 4  ;;  %s144_s12 = smov [#allocation2]   ;;  %s16_s11 = int_to_ptr.hbm [resolvable:$true] %s15_s11 }
   0x3   :  { %s17_s13 = sshll.u32 %s144_s12, 4  ;;  %s26_s16 = sshll.u32 %s172_s1, 4  ;;  %s18_s13 = int_to_ptr.vmem [resolvable:$true] %s17_s13  ;;  %s27_s16 = int_to_ptr.hbm [resolvable:$true] %s26_s16 }
   0x4   :  { %20 = dma.hbm_to_vmem [thread:$0]  %s16_s11, 128, %s18_s13, [#allocation3]  }
   0x5   :  { %s145_s17 = smov [#allocation5]  }
   0x6   :  { %s28_s18 = sshll.u32 %s145_s17, 4  ;;  %s29_s18 = int_to_ptr.vmem [resolvable:$true] %s28_s18 }
   0x7   :  { %31 = dma.hbm_to_vmem [thread:$0]  %s27_s16, 128, %s29_s18, [#allocation6]  }
   0x8   :  { %138 = dma.done.wait [#allocation3], 128  }
   0x9   :  { %139 = vsyncadd [#allocation3], 4294967168 }
   0xa   :  { %140 = dma.done.wait [#allocation6], 128  }
   0xb   :  { %141 = vsyncadd [#allocation6], 4294967168  ;;  %s146_s19 = smov [#allocation7]   ;;  %s52_s22 = sshll.u32 %s173_s2, 4  ;;  %v40_v0 = vld [vmem:[#allocation2] sm:$0xff]  ;;  %v41_v1 = vld [vmem:[#allocation5] sm:$0xff]  ;;  %s53_s22 = int_to_ptr.hbm [resolvable:$true] %s52_s22 }
   0xc   :  { %s50_s0 = sshll.u32 %s146_s19, 4  ;;  %vm43_vm0 = vcmask 523264   ;;  %v42_v2 = vadd.f32 %v41_v1, %v40_v0  ;;  %s51_s0 = int_to_ptr.vmem [resolvable:$true] %s50_s0 }
   0xe   :  { %44 = vst.msk [vmem:[#allocation7] sm:$0xff] %vm43_vm0, %v42_v2 }
   0xf   :  { %55 = dma.vmem_to_hbm [thread:$0]  %s51_s0, 128, %s53_s22, [#allocation4]  }
  0x10   :  { %142 = dma.done.wait [#allocation4], 128  }
  0x11   :  { %143 = vsyncadd [#allocation4], 4294967168 }
  0x12   :  { %60 = vsyncpa [#allocation3], 1 }
  0x13   :  { %61 = vsyncpa [#allocation6], 1 }
  0x14   :  { %62 = vsyncpa [#allocation4], 1 }

</bundles_post_ra>
